<compile_context>
chip_gen: v6e
topology: v6e:2x2x1
jax: 0.10.0
libtpu: 0.0.40
codegen_flags: <defaults>
</compile_context>

<pallas_src>
import jax
import jax.numpy as jnp
from jax.experimental import pallas as pl
from jax.experimental.pallas import tpu as pltpu


def _round_up(x, m):
    return -(-x // m) * m


def _pad_vocab(vocab):
    """Lane-dense vocab padding: multiple of 128; promote to a multiple of 512
    when the extra padding is <= 12.5% so wider, better-pipelined tiles fit."""
    v512 = _round_up(vocab, 512)
    if (v512 - vocab) * 8 <= v512:
        return v512
    return _round_up(vocab, 128)


def _vocab_tile(v_pad, hidden, budget_bytes=4 << 20):
    """Widest lane-dense tile that divides v_pad while keeping the
    double-buffered w_out tile (2 * 4B * hidden * tv) within a VMEM budget."""
    for tv in (1024, 512, 256, 128):
        if v_pad % tv == 0 and 8 * hidden * tv <= budget_bytes:
            return tv
    return 128


def _luong_step_kernel(emb_ref, hprev_ref, enc_ref, u_h_ref, u_e_ref,
                       w_ih_ref, b_ih_ref, w_hh_ref, b_hh_ref,
                       wc_h_ref, wc_c_ref, b_c_ref,
                       w_out_ref, b_out_ref,
                       out_ref, newh_ref, attn_ref,
                       cat_scratch):
    H = hprev_ref.shape[-1]
    j = pl.program_id(0)

    # Heavy per-step work runs once (grid step 0); result lives in VMEM scratch.
    @pl.when(j == 0)
    def _():
        emb = emb_ref[...]                      # (B, H)
        h_prev = hprev_ref[...]                 # (B, H)
        enc = enc_ref[...]                      # (L, B, H)  seq-major, as given

        # ---- GRU cell, one step, PyTorch gate order (r, z, n) ----
        gi = jnp.dot(emb, w_ih_ref[...], preferred_element_type=jnp.float32) + b_ih_ref[...]
        gh = jnp.dot(h_prev, w_hh_ref[...], preferred_element_type=jnp.float32) + b_hh_ref[...]
        r = jax.nn.sigmoid(gi[:, 0:H] + gh[:, 0:H])
        z = jax.nn.sigmoid(gi[:, H:2 * H] + gh[:, H:2 * H])
        n = jnp.tanh(gi[:, 2 * H:3 * H] + r * gh[:, 2 * H:3 * H])
        h_new = (1.0 - z) * n + z * h_prev      # (B, H)  == rnn_output == new hidden
        newh_ref[...] = h_new.astype(newh_ref.dtype)

        # ---- 'concat' attention, algebraically collapsed ----
        # score(h,e) = v.(W_a [h;e] + b_a) = h.u_h + e.u_e + v.b_a
        # (v.b_a is constant along L and cancels in the softmax -> dropped exactly)
        e_lb = jnp.sum(enc * u_e_ref[...][None, :, :], axis=-1)        # (L, B)
        hu = jnp.sum(h_new * u_h_ref[...], axis=-1, keepdims=True)     # (B, 1)
        energy = jnp.transpose(e_lb) + hu                              # (B, L)

        m = jnp.max(energy, axis=-1, keepdims=True)
        p = jnp.exp(energy - m)
        denom = jnp.sum(p, axis=-1, keepdims=True)
        attn = p * pl.reciprocal(denom, approx=True)                   # (B, L)
        attn_ref[...] = attn.astype(attn_ref.dtype)

        # context[b,h] = sum_l attn[b,l] * enc[l,b,h]   (enc kept seq-major)
        ctx = jnp.sum(jnp.transpose(attn)[:, :, None] * enc, axis=0)   # (B, H)

        # ---- concat layer: tanh(W_c [h_new ; ctx] + b_c), concat avoided by
        # pre-splitting W_c into its h- and ctx- halves ----
        cat = jnp.tanh(
            jnp.dot(h_new, wc_h_ref[...], preferred_element_type=jnp.float32)
            + jnp.dot(ctx, wc_c_ref[...], preferred_element_type=jnp.float32)
            + b_c_ref[...])
        cat_scratch[...] = cat

    # ---- output projection, one vocab tile per grid step (lane-dense stores) ----
    logits = jnp.dot(cat_scratch[...], w_out_ref[...],
                     preferred_element_type=jnp.float32) + b_out_ref[...]
    # stable logsigmoid(x) = min(x, 0) - log(1 + exp(-|x|))
    out_ref[...] = (jnp.minimum(logits, 0.0)
                    - jnp.log(1.0 + jnp.exp(-jnp.abs(logits)))).astype(out_ref.dtype)


def init_params(key, hidden_size, output_size):
    """Raw parameters in PyTorch layout."""
    H, V = hidden_size, output_size
    ks = jax.random.split(key, 12)
    nrm = lambda k, shape: jax.random.normal(k, shape, jnp.float32) * 0.1
    return {
        'embedding': nrm(ks[0], (V, H)),
        'w_attn':    nrm(ks[1], (H, 2 * H)),   # Attn: nn.Linear(2H, H).weight
        'b_attn':    nrm(ks[2], (H,)),
        'v':         nrm(ks[3], (H,)),         # nn.Parameter(1, H) squeezed
        'w_ih':      nrm(ks[4], (3 * H, H)),   # GRU weight_ih_l0
        'b_ih':      nrm(ks[5], (3 * H,)),
        'w_hh':      nrm(ks[6], (3 * H, H)),
        'b_hh':      nrm(ks[7], (3 * H,)),
        'w_concat':  nrm(ks[8], (H, 2 * H)),   # self.concat = nn.Linear(2H, H)
        'b_concat':  nrm(ks[9], (H,)),
        'w_out':     nrm(ks[10], (V, H)),
        'b_out':     nrm(ks[11], (V,)),
    }


def pack_params(raw):
    """One-time conversion of PyTorch-layout params into kernel-ready form
    (pre-transposed / pre-split / attention collapsed / vocab padded)."""
    H = raw['w_hh'].shape[1]
    V = raw['w_out'].shape[0]
    V_pad = _pad_vocab(V)
    w_attn = raw['w_attn']                                  # (H, 2H)
    v = raw['v']                                            # (H,)
    return {
        'embedding': raw['embedding'],
        # collapsed attention: torch.cat order in score() is [hidden ; encoder]
        'u_h': (v @ w_attn[:, :H]).reshape(1, H),
        'u_e': (v @ w_attn[:, H:]).reshape(1, H),
        # GRU (pre-transposed to x @ W form)
        'w_ih_t': raw['w_ih'].T,                            # (H, 3H)
        'b_ih': raw['b_ih'].reshape(1, 3 * H),
        'w_hh_t': raw['w_hh'].T,                            # (H, 3H)
        'b_hh': raw['b_hh'].reshape(1, 3 * H),
        # concat Linear split into [rnn_output ; context] halves
        'wc_h_t': raw['w_concat'][:, :H].T,                 # (H, H)
        'wc_c_t': raw['w_concat'][:, H:].T,                 # (H, H)
        'b_c': raw['b_concat'].reshape(1, H),
        # output projection, pre-transposed and padded to a lane-dense width
        'w_out_t': jnp.pad(raw['w_out'].T, ((0, 0), (0, V_pad - V))),   # (H, V_pad)
        'b_out': jnp.pad(raw['b_out'], (0, V_pad - V)).reshape(1, V_pad),
    }


@jax.jit
def luong_attn_decoder_step(word_input, last_hidden, encoder_outputs, kp):
    """word_input (B,) int32, last_hidden (1,B,H), encoder_outputs (L,B,H)."""
    B = word_input.shape[0]
    L, _, H = encoder_outputs.shape
    V = kp['embedding'].shape[0]
    V_pad = kp['w_out_t'].shape[1]
    TV = _vocab_tile(V_pad, H)       # adaptive lane-dense vocab tile width
    grid = (V_pad // TV,)

    emb = kp['embedding'][word_input]     # (B, H) gather; embedding_dropout == identity
    h_prev = last_hidden[-1]              # (B, H), n_layers = 1

    c2 = lambda j: (0, 0)
    c3 = lambda j: (0, 0, 0)
    in_specs = [
        pl.BlockSpec((B, H), c2),            # emb
        pl.BlockSpec((B, H), c2),            # h_prev  (aliased with new hidden)
        pl.BlockSpec((L, B, H), c3),         # encoder_outputs, seq-major
        pl.BlockSpec((1, H), c2),            # u_h
        pl.BlockSpec((1, H), c2),            # u_e
        pl.BlockSpec((H, 3 * H), c2),        # w_ih_t
        pl.BlockSpec((1, 3 * H), c2),        # b_ih
        pl.BlockSpec((H, 3 * H), c2),        # w_hh_t
        pl.BlockSpec((1, 3 * H), c2),        # b_hh
        pl.BlockSpec((H, H), c2),            # wc_h_t
        pl.BlockSpec((H, H), c2),            # wc_c_t
        pl.BlockSpec((1, H), c2),            # b_c
        pl.BlockSpec((H, TV), lambda j: (0, j)),   # w_out tile (streams over grid)
        pl.BlockSpec((1, TV), lambda j: (0, j)),   # b_out tile
    ]
    out_specs = (
        pl.BlockSpec((B, TV), lambda j: (0, j)),   # logsigmoid(logits) tile
        pl.BlockSpec((B, H), c2),                  # new hidden
        pl.BlockSpec((B, L), c2),                  # attention weights
    )

    flops = (2 * B * H * 3 * H * 2          # GRU matmuls
             + 4 * L * B * H                # energy + context
             + 2 * B * H * H * 2            # concat linear halves
             + 2 * B * H * V_pad)           # output projection
    transcendentals = B * (4 * H + L) + B * V_pad
    bytes_accessed = 4 * (2 * B * H + L * B * H + 2 * H
                          + 2 * (H * 3 * H + 3 * H) + 2 * H * H + H
                          + H * V_pad + V_pad
                          + B * V_pad + B * H + B * L)

    out_pad, new_h, attn = pl.pallas_call(
        _luong_step_kernel,
        out_shape=(jax.ShapeDtypeStruct((B, V_pad), jnp.float32),
                   jax.ShapeDtypeStruct((B, H), jnp.float32),
                   jax.ShapeDtypeStruct((B, L), jnp.float32)),
        grid_spec=pltpu.PrefetchScalarGridSpec(
            num_scalar_prefetch=0,
            grid=grid,
            in_specs=in_specs,
            out_specs=out_specs,
            scratch_shapes=[pltpu.VMEM((B, H), jnp.float32)]),
        input_output_aliases={1: 1},     # h_prev buffer reused for the new hidden
        compiler_params=pltpu.CompilerParams(
            dimension_semantics=("arbitrary",),   # step 0 fills the VMEM scratch
            vmem_limit_bytes=32 * 1024 * 1024),
        cost_estimate=pl.CostEstimate(flops=flops,
                                      transcendentals=transcendentals,
                                      bytes_accessed=bytes_accessed),
    )(emb, h_prev, encoder_outputs,
      kp['u_h'], kp['u_e'],
      kp['w_ih_t'], kp['b_ih'], kp['w_hh_t'], kp['b_hh'],
      kp['wc_h_t'], kp['wc_c_t'], kp['b_c'],
      kp['w_out_t'], kp['b_out'])

    output = out_pad[:, :V]            # drop vocab padding
    hidden = new_h[None]               # (1, B, H)
    attn_weights = attn[:, None, :]    # (B, 1, L)  == .unsqueeze(1)
    return output, hidden, attn_weights


def _reference(word_input, last_hidden, encoder_outputs, raw):
    """Pure-JAX mirror of the PyTorch LuongAttnDecoderRNN.forward (eval mode)."""
    H = raw['w_hh'].shape[1]
    emb = raw['embedding'][word_input]                     # (B, H)
    h = last_hidden[-1]                                    # (B, H)
    gi = emb @ raw['w_ih'].T + raw['b_ih']
    gh = h @ raw['w_hh'].T + raw['b_hh']
    r = jax.nn.sigmoid(gi[:, :H] + gh[:, :H])
    z = jax.nn.sigmoid(gi[:, H:2 * H] + gh[:, H:2 * H])
    n = jnp.tanh(gi[:, 2 * H:] + r * gh[:, 2 * H:])
    h_new = (1.0 - z) * n + z * h                          # rnn_output == hidden
    enc_bl = jnp.transpose(encoder_outputs, (1, 0, 2))     # (B, L, H)
    cat = jnp.concatenate(
        [jnp.broadcast_to(h_new[:, None, :], enc_bl.shape), enc_bl], axis=-1)
    energy = jnp.einsum('blk,hk->blh', cat, raw['w_attn']) + raw['b_attn']
    scores = jnp.einsum('blh,h->bl', energy, raw['v'])
    attn = jax.nn.softmax(scores, axis=-1)                 # (B, L)
    ctx = jnp.einsum('bl,blh->bh', attn, enc_bl)
    cat2 = jnp.concatenate([h_new, ctx], axis=-1)
    concat_out = jnp.tanh(cat2 @ raw['w_concat'].T + raw['b_concat'])
    logits = concat_out @ raw['w_out'].T + raw['b_out']
    return jax.nn.log_sigmoid(logits), h_new[None], attn[:, None, :]


def _check(B, L, H, V, seed):
    key = jax.random.PRNGKey(seed)
    kparam_key, k1, k2, k3 = jax.random.split(key, 4)

    raw_params = init_params(kparam_key, hidden_size=H, output_size=V)
    kparams = pack_params(raw_params)      # one-time packing (not per decode step)

    word_input = jax.random.randint(k1, (B,), 0, V, dtype=jnp.int32)
    last_hidden = jax.random.normal(k2, (1, B, H), jnp.float32)
    encoder_outputs = jax.random.normal(k3, (L, B, H), jnp.float32)

    out, hidden, attn_weights = luong_attn_decoder_step(
        word_input, last_hidden, encoder_outputs, kparams)
    jax.block_until_ready((out, hidden, attn_weights))

    ref_out, ref_hidden, ref_attn = _reference(
        word_input, last_hidden, encoder_outputs, raw_params)
    assert out.shape == (B, V) and hidden.shape == (1, B, H) \
        and attn_weights.shape == (B, 1, L)
    # tolerance loosened slightly for the EUP approximate-reciprocal softmax
    assert jnp.allclose(hidden, ref_hidden, atol=1e-4, rtol=1e-4)
    assert jnp.allclose(attn_weights, ref_attn, atol=2e-3, rtol=2e-3)
    assert jnp.allclose(out, ref_out, atol=2e-3, rtol=2e-3)


if __name__ == "__main__":
    # config 1: vocab 2500 -> padded to 2560 -> 512-wide tiles, grid=(5,)
    #           (exercises the streamed multi-tile vocab projection)
    _check(B=2, L=8, H=32, V=2500, seed=0)
    # config 2: tiny vocab 160 -> padded to 256 -> single 256-wide tile, grid=(1,)
    _check(B=2, L=8, H=32, V=160, seed=0)
    print("KERNEL_OK")
</pallas_src>

<mosaic_0001>
module attributes {stable_mosaic.version = 11 : i64} {
  func.func @_luong_step_kernel(%arg0: i32, %arg1: memref<2x32xf32, #tpu.memory_space<vmem>>, %arg2: memref<2x32xf32, #tpu.memory_space<vmem>>, %arg3: memref<8x2x32xf32, #tpu.memory_space<vmem>>, %arg4: memref<1x32xf32, #tpu.memory_space<vmem>>, %arg5: memref<1x32xf32, #tpu.memory_space<vmem>>, %arg6: memref<32x96xf32, #tpu.memory_space<vmem>>, %arg7: memref<1x96xf32, #tpu.memory_space<vmem>>, %arg8: memref<32x96xf32, #tpu.memory_space<vmem>>, %arg9: memref<1x96xf32, #tpu.memory_space<vmem>>, %arg10: memref<32x32xf32, #tpu.memory_space<vmem>>, %arg11: memref<32x32xf32, #tpu.memory_space<vmem>>, %arg12: memref<1x32xf32, #tpu.memory_space<vmem>>, %arg13: memref<32x512xf32, #tpu.memory_space<vmem>>, %arg14: memref<1x512xf32, #tpu.memory_space<vmem>>, %arg15: memref<2x512xf32, #tpu.memory_space<vmem>>, %arg16: memref<2x32xf32, #tpu.memory_space<vmem>>, %arg17: memref<2x8xf32, #tpu.memory_space<vmem>>, %arg18: memref<2x32xf32, #tpu.memory_space<vmem>>) attributes {dimension_semantics = [#tpu.dimension_semantics<arbitrary>], iteration_bounds = array<i64: 5>, scalar_prefetch = 0 : i64, scratch_operands = 1 : i64, tpu.core_type = #tpu.core_type<tc>, window_params = [{pipeline_mode = #tpu.pipeline_mode<synchronous>, transform_indices = @transform_0, window_bounds = array<i64: 2, 32>}, {pipeline_mode = #tpu.pipeline_mode<synchronous>, transform_indices = @transform_1, window_bounds = array<i64: 2, 32>}, {pipeline_mode = #tpu.pipeline_mode<synchronous>, transform_indices = @transform_2, window_bounds = array<i64: 8, 2, 32>}, {pipeline_mode = #tpu.pipeline_mode<synchronous>, transform_indices = @transform_3, window_bounds = array<i64: 1, 32>}, {pipeline_mode = #tpu.pipeline_mode<synchronous>, transform_indices = @transform_4, window_bounds = array<i64: 1, 32>}, {pipeline_mode = #tpu.pipeline_mode<synchronous>, transform_indices = @transform_5, window_bounds = array<i64: 32, 96>}, {pipeline_mode = #tpu.pipeline_mode<synchronous>, transform_indices = @transform_6, window_bounds = array<i64: 1, 96>}, {pipeline_mode = #tpu.pipeline_mode<synchronous>, transform_indices = @transform_7, window_bounds = array<i64: 32, 96>}, {pipeline_mode = #tpu.pipeline_mode<synchronous>, transform_indices = @transform_8, window_bounds = array<i64: 1, 96>}, {pipeline_mode = #tpu.pipeline_mode<synchronous>, transform_indices = @transform_9, window_bounds = array<i64: 32, 32>}, {pipeline_mode = #tpu.pipeline_mode<synchronous>, transform_indices = @transform_10, window_bounds = array<i64: 32, 32>}, {pipeline_mode = #tpu.pipeline_mode<synchronous>, transform_indices = @transform_11, window_bounds = array<i64: 1, 32>}, {transform_indices = @transform_12, window_bounds = array<i64: 32, 512>}, {transform_indices = @transform_13, window_bounds = array<i64: 1, 512>}, {transform_indices = @transform_14, window_bounds = array<i64: 2, 512>}, {pipeline_mode = #tpu.pipeline_mode<synchronous>, transform_indices = @transform_15, window_bounds = array<i64: 2, 32>}, {pipeline_mode = #tpu.pipeline_mode<synchronous>, transform_indices = @transform_16, window_bounds = array<i64: 2, 8>}]} {
    %c0_i32 = arith.constant 0 : i32
    %0 = arith.cmpi eq, %arg0, %c0_i32 : i32
    %1 = arith.extui %0 : i1 to i32
    %c0_i32_0 = arith.constant 0 : i32
    %2 = arith.cmpi ne, %1, %c0_i32_0 : i32
    scf.if %2 {
      %c0_11 = arith.constant 0 : index
      %c0_12 = arith.constant 0 : index
      %20 = vector.load %arg1[%c0_11, %c0_12] : memref<2x32xf32, #tpu.memory_space<vmem>>, vector<2x32xf32>
      %c0_13 = arith.constant 0 : index
      %c0_14 = arith.constant 0 : index
      %21 = vector.load %arg2[%c0_13, %c0_14] : memref<2x32xf32, #tpu.memory_space<vmem>>, vector<2x32xf32>
      %c0_15 = arith.constant 0 : index
      %c0_16 = arith.constant 0 : index
      %c0_17 = arith.constant 0 : index
      %22 = vector.load %arg3[%c0_15, %c0_16, %c0_17] : memref<8x2x32xf32, #tpu.memory_space<vmem>>, vector<8x2x32xf32>
      %c0_18 = arith.constant 0 : index
      %c0_19 = arith.constant 0 : index
      %23 = vector.load %arg6[%c0_18, %c0_19] : memref<32x96xf32, #tpu.memory_space<vmem>>, vector<32x96xf32>
      %cst_20 = arith.constant dense<0.000000e+00> : vector<2x96xf32>
      %24 = tpu.matmul %20, %23, %cst_20 {dimension_numbers = #tpu.dot_dimension_numbers<[1], [0], [0], [1], [0, 0, 1, 1], [], []>} : vector<2x32xf32>, vector<32x96xf32>, vector<2x96xf32> -> vector<2x96xf32>
      %c0_21 = arith.constant 0 : index
      %c0_22 = arith.constant 0 : index
      %25 = vector.load %arg7[%c0_21, %c0_22] : memref<1x96xf32, #tpu.memory_space<vmem>>, vector<1x96xf32>
      %26 = vector.broadcast %25 : vector<1x96xf32> to vector<2x96xf32>
      %27 = arith.addf %24, %26 : vector<2x96xf32>
      %c0_23 = arith.constant 0 : index
      %c0_24 = arith.constant 0 : index
      %28 = vector.load %arg8[%c0_23, %c0_24] : memref<32x96xf32, #tpu.memory_space<vmem>>, vector<32x96xf32>
      %cst_25 = arith.constant dense<0.000000e+00> : vector<2x96xf32>
      %29 = tpu.matmul %21, %28, %cst_25 {dimension_numbers = #tpu.dot_dimension_numbers<[1], [0], [0], [1], [0, 0, 1, 1], [], []>} : vector<2x32xf32>, vector<32x96xf32>, vector<2x96xf32> -> vector<2x96xf32>
      %c0_26 = arith.constant 0 : index
      %c0_27 = arith.constant 0 : index
      %30 = vector.load %arg9[%c0_26, %c0_27] : memref<1x96xf32, #tpu.memory_space<vmem>>, vector<1x96xf32>
      %31 = vector.broadcast %30 : vector<1x96xf32> to vector<2x96xf32>
      %32 = arith.addf %29, %31 : vector<2x96xf32>
      %33 = vector.extract_strided_slice %27 {offsets = [0, 0], sizes = [2, 32], strides = [1, 1]} : vector<2x96xf32> to vector<2x32xf32>
      %34 = vector.extract_strided_slice %32 {offsets = [0, 0], sizes = [2, 32], strides = [1, 1]} : vector<2x96xf32> to vector<2x32xf32>
      %35 = arith.addf %33, %34 : vector<2x32xf32>
      %36 = arith.negf %35 : vector<2x32xf32>
      %37 = math.exp %36 : vector<2x32xf32>
      %cst_28 = arith.constant 1.000000e+00 : f32
      %38 = vector.broadcast %cst_28 : f32 to vector<2x32xf32>
      %39 = arith.addf %38, %37 : vector<2x32xf32>
      %40 = arith.divf %38, %39 : vector<2x32xf32>
      %41 = vector.extract_strided_slice %27 {offsets = [0, 32], sizes = [2, 32], strides = [1, 1]} : vector<2x96xf32> to vector<2x32xf32>
      %42 = vector.extract_strided_slice %32 {offsets = [0, 32], sizes = [2, 32], strides = [1, 1]} : vector<2x96xf32> to vector<2x32xf32>
      %43 = arith.addf %41, %42 : vector<2x32xf32>
      %44 = arith.negf %43 : vector<2x32xf32>
      %45 = math.exp %44 : vector<2x32xf32>
      %cst_29 = arith.constant 1.000000e+00 : f32
      %46 = vector.broadcast %cst_29 : f32 to vector<2x32xf32>
      %47 = arith.addf %46, %45 : vector<2x32xf32>
      %48 = arith.divf %46, %47 : vector<2x32xf32>
      %49 = vector.extract_strided_slice %27 {offsets = [0, 64], sizes = [2, 32], strides = [1, 1]} : vector<2x96xf32> to vector<2x32xf32>
      %50 = vector.extract_strided_slice %32 {offsets = [0, 64], sizes = [2, 32], strides = [1, 1]} : vector<2x96xf32> to vector<2x32xf32>
      %51 = arith.mulf %40, %50 : vector<2x32xf32>
      %52 = arith.addf %49, %51 : vector<2x32xf32>
      %53 = math.tanh %52 : vector<2x32xf32>
      %cst_30 = arith.constant 1.000000e+00 : f32
      %54 = vector.broadcast %cst_30 : f32 to vector<2x32xf32>
      %55 = arith.subf %54, %48 : vector<2x32xf32>
      %56 = arith.mulf %55, %53 : vector<2x32xf32>
      %57 = arith.mulf %48, %21 : vector<2x32xf32>
      %58 = arith.addf %56, %57 : vector<2x32xf32>
      %c0_31 = arith.constant 0 : index
      %c0_32 = arith.constant 0 : index
      %59 = vector.load %arg16[%c0_31, %c0_32] : memref<2x32xf32, #tpu.memory_space<vmem>>, vector<2x32xf32>
      tpu.vector_store %arg16[%c0_31, %c0_32], %58 {strides = array<i32>} : memref<2x32xf32, #tpu.memory_space<vmem>>, vector<2x32xf32>,
      %c0_33 = arith.constant 0 : index
      %c0_34 = arith.constant 0 : index
      %60 = vector.load %arg5[%c0_33, %c0_34] : memref<1x32xf32, #tpu.memory_space<vmem>>, vector<1x32xf32>
      %61 = vector.shape_cast %60 : vector<1x32xf32> to vector<1x1x32xf32>
      %62 = vector.broadcast %61 : vector<1x1x32xf32> to vector<8x2x32xf32>
      %63 = arith.mulf %22, %62 : vector<8x2x32xf32>
      %cst_35 = arith.constant dense<0.000000e+00> : vector<8x2xf32>
      %64 = vector.multi_reduction <add>, %63, %cst_35 [2] : vector<8x2x32xf32> to vector<8x2xf32>
      %c0_36 = arith.constant 0 : index
      %c0_37 = arith.constant 0 : index
      %65 = vector.load %arg4[%c0_36, %c0_37] : memref<1x32xf32, #tpu.memory_space<vmem>>, vector<1x32xf32>
      %66 = vector.broadcast %65 : vector<1x32xf32> to vector<2x32xf32>
      %67 = arith.mulf %58, %66 : vector<2x32xf32>
      %cst_38 = arith.constant dense<0.000000e+00> : vector<2xf32>
      %68 = vector.multi_reduction <add>, %67, %cst_38 [1] : vector<2x32xf32> to vector<2xf32>
      %69 = vector.shape_cast %68 : vector<2xf32> to vector<2x1xf32>
      %70 = tpu.transpose %64, [1, 0] : vector<8x2xf32> -> vector<2x8xf32>
      %71 = vector.broadcast %69 : vector<2x1xf32> to vector<2x8xf32>
      %72 = arith.addf %70, %71 : vector<2x8xf32>
      %cst_39 = arith.constant dense<0xFF800000> : vector<2xf32>
      %73 = vector.multi_reduction <maximumf>, %72, %cst_39 [1] : vector<2x8xf32> to vector<2xf32>
      %74 = vector.shape_cast %73 : vector<2xf32> to vector<2x1xf32>
      %75 = vector.broadcast %74 : vector<2x1xf32> to vector<2x8xf32>
      %76 = arith.subf %72, %75 : vector<2x8xf32>
      %77 = math.exp %76 : vector<2x8xf32>
      %cst_40 = arith.constant dense<0.000000e+00> : vector<2xf32>
      %78 = vector.multi_reduction <add>, %77, %cst_40 [1] : vector<2x8xf32> to vector<2xf32>
      %79 = vector.shape_cast %78 : vector<2xf32> to vector<2x1xf32>
      %80 = tpu.reciprocal %79 {approx = true} : vector<2x1xf32> -> vector<2x1xf32>
      %81 = vector.broadcast %80 : vector<2x1xf32> to vector<2x8xf32>
      %82 = arith.mulf %77, %81 : vector<2x8xf32>
      %c0_41 = arith.constant 0 : index
      %c0_42 = arith.constant 0 : index
      %83 = vector.load %arg17[%c0_41, %c0_42] : memref<2x8xf32, #tpu.memory_space<vmem>>, vector<2x8xf32>
      tpu.vector_store %arg17[%c0_41, %c0_42], %82 {strides = array<i32>} : memref<2x8xf32, #tpu.memory_space<vmem>>, vector<2x8xf32>,
      %84 = tpu.transpose %82, [1, 0] : vector<2x8xf32> -> vector<8x2xf32>
      %85 = vector.shape_cast %84 : vector<8x2xf32> to vector<8x2x1xf32>
      %86 = vector.broadcast %85 : vector<8x2x1xf32> to vector<8x2x32xf32>
      %87 = arith.mulf %86, %22 : vector<8x2x32xf32>
      %cst_43 = arith.constant dense<0.000000e+00> : vector<2x32xf32>
      %88 = vector.multi_reduction <add>, %87, %cst_43 [0] : vector<8x2x32xf32> to vector<2x32xf32>
      %c0_44 = arith.constant 0 : index
      %c0_45 = arith.constant 0 : index
      %89 = vector.load %arg10[%c0_44, %c0_45] : memref<32x32xf32, #tpu.memory_space<vmem>>, vector<32x32xf32>
      %cst_46 = arith.constant dense<0.000000e+00> : vector<2x32xf32>
      %90 = tpu.matmul %58, %89, %cst_46 {dimension_numbers = #tpu.dot_dimension_numbers<[1], [0], [0], [1], [0, 0, 1, 1], [], []>} : vector<2x32xf32>, vector<32x32xf32>, vector<2x32xf32> -> vector<2x32xf32>
      %c0_47 = arith.constant 0 : index
      %c0_48 = arith.constant 0 : index
      %91 = vector.load %arg11[%c0_47, %c0_48] : memref<32x32xf32, #tpu.memory_space<vmem>>, vector<32x32xf32>
      %cst_49 = arith.constant dense<0.000000e+00> : vector<2x32xf32>
      %92 = tpu.matmul %88, %91, %cst_49 {dimension_numbers = #tpu.dot_dimension_numbers<[1], [0], [0], [1], [0, 0, 1, 1], [], []>} : vector<2x32xf32>, vector<32x32xf32>, vector<2x32xf32> -> vector<2x32xf32>
      %93 = arith.addf %90, %92 : vector<2x32xf32>
      %c0_50 = arith.constant 0 : index
      %c0_51 = arith.constant 0 : index
      %94 = vector.load %arg12[%c0_50, %c0_51] : memref<1x32xf32, #tpu.memory_space<vmem>>, vector<1x32xf32>
      %95 = vector.broadcast %94 : vector<1x32xf32> to vector<2x32xf32>
      %96 = arith.addf %93, %95 : vector<2x32xf32>
      %97 = math.tanh %96 : vector<2x32xf32>
      %c0_52 = arith.constant 0 : index
      %c0_53 = arith.constant 0 : index
      %98 = vector.load %arg18[%c0_52, %c0_53] : memref<2x32xf32, #tpu.memory_space<vmem>>, vector<2x32xf32>
      tpu.vector_store %arg18[%c0_52, %c0_53], %97 {strides = array<i32>} : memref<2x32xf32, #tpu.memory_space<vmem>>, vector<2x32xf32>,
    } else {
    }
    %c0 = arith.constant 0 : index
    %c0_1 = arith.constant 0 : index
    %3 = vector.load %arg18[%c0, %c0_1] : memref<2x32xf32, #tpu.memory_space<vmem>>, vector<2x32xf32>
    %c0_2 = arith.constant 0 : index
    %c0_3 = arith.constant 0 : index
    %4 = vector.load %arg13[%c0_2, %c0_3] : memref<32x512xf32, #tpu.memory_space<vmem>>, vector<32x512xf32>
    %cst = arith.constant dense<0.000000e+00> : vector<2x512xf32>
    %5 = tpu.matmul %3, %4, %cst {dimension_numbers = #tpu.dot_dimension_numbers<[1], [0], [0], [1], [0, 0, 1, 1], [], []>} : vector<2x32xf32>, vector<32x512xf32>, vector<2x512xf32> -> vector<2x512xf32>
    %c0_4 = arith.constant 0 : index
    %c0_5 = arith.constant 0 : index
    %6 = vector.load %arg14[%c0_4, %c0_5] : memref<1x512xf32, #tpu.memory_space<vmem>>, vector<1x512xf32>
    %7 = vector.broadcast %6 : vector<1x512xf32> to vector<2x512xf32>
    %8 = arith.addf %5, %7 : vector<2x512xf32>
    %cst_6 = arith.constant 0.000000e+00 : f32
    %9 = vector.broadcast %cst_6 : f32 to vector<2x512xf32>
    %10 = arith.minimumf %8, %9 : vector<2x512xf32>
    %11 = math.absf %8 : vector<2x512xf32>
    %cst_7 = arith.constant 0.000000e+00 : f32
    %12 = vector.broadcast %cst_7 : f32 to vector<2x512xf32>
    %13 = arith.subf %12, %11 : vector<2x512xf32>
    %14 = math.exp %13 : vector<2x512xf32>
    %cst_8 = arith.constant 1.000000e+00 : f32
    %15 = vector.broadcast %cst_8 : f32 to vector<2x512xf32>
    %16 = arith.addf %15, %14 : vector<2x512xf32>
    %17 = math.log %16 : vector<2x512xf32>
    %18 = arith.subf %10, %17 : vector<2x512xf32>
    %c0_9 = arith.constant 0 : index
    %c0_10 = arith.constant 0 : index
    %19 = vector.load %arg15[%c0_9, %c0_10] : memref<2x512xf32, #tpu.memory_space<vmem>>, vector<2x512xf32>
    tpu.vector_store %arg15[%c0_9, %c0_10], %18 {strides = array<i32>} : memref<2x512xf32, #tpu.memory_space<vmem>>, vector<2x512xf32>,
    return
  }
  func.func @transform_0(%arg0: i32) -> (i32, i32) {
    %c0_i32 = arith.constant 0 : i32
    %c0_i32_0 = arith.constant 0 : i32
    %c0_i32_1 = arith.constant 0 : i32
    return %c0_i32, %c0_i32_0 : i32, i32
  }
  func.func @transform_1(%arg0: i32) -> (i32, i32) {
    %c0_i32 = arith.constant 0 : i32
    %c0_i32_0 = arith.constant 0 : i32
    %c0_i32_1 = arith.constant 0 : i32
    return %c0_i32, %c0_i32_0 : i32, i32
  }
  func.func @transform_2(%arg0: i32) -> (i32, i32, i32) {
    %c0_i32 = arith.constant 0 : i32
    %c0_i32_0 = arith.constant 0 : i32
    %c0_i32_1 = arith.constant 0 : i32
    %c0_i32_2 = arith.constant 0 : i32
    return %c0_i32, %c0_i32_0, %c0_i32_1 : i32, i32, i32
  }
  func.func @transform_3(%arg0: i32) -> (i32, i32) {
    %c0_i32 = arith.constant 0 : i32
    %c0_i32_0 = arith.constant 0 : i32
    %c0_i32_1 = arith.constant 0 : i32
    return %c0_i32, %c0_i32_0 : i32, i32
  }
  func.func @transform_4(%arg0: i32) -> (i32, i32) {
    %c0_i32 = arith.constant 0 : i32
    %c0_i32_0 = arith.constant 0 : i32
    %c0_i32_1 = arith.constant 0 : i32
    return %c0_i32, %c0_i32_0 : i32, i32
  }
  func.func @transform_5(%arg0: i32) -> (i32, i32) {
    %c0_i32 = arith.constant 0 : i32
    %c0_i32_0 = arith.constant 0 : i32
    %c0_i32_1 = arith.constant 0 : i32
    return %c0_i32, %c0_i32_0 : i32, i32
  }
  func.func @transform_6(%arg0: i32) -> (i32, i32) {
    %c0_i32 = arith.constant 0 : i32
    %c0_i32_0 = arith.constant 0 : i32
    %c0_i32_1 = arith.constant 0 : i32
    return %c0_i32, %c0_i32_0 : i32, i32
  }
  func.func @transform_7(%arg0: i32) -> (i32, i32) {
    %c0_i32 = arith.constant 0 : i32
    %c0_i32_0 = arith.constant 0 : i32
    %c0_i32_1 = arith.constant 0 : i32
    return %c0_i32, %c0_i32_0 : i32, i32
  }
  func.func @transform_8(%arg0: i32) -> (i32, i32) {
    %c0_i32 = arith.constant 0 : i32
    %c0_i32_0 = arith.constant 0 : i32
    %c0_i32_1 = arith.constant 0 : i32
    return %c0_i32, %c0_i32_0 : i32, i32
  }
  func.func @transform_9(%arg0: i32) -> (i32, i32) {
    %c0_i32 = arith.constant 0 : i32
    %c0_i32_0 = arith.constant 0 : i32
    %c0_i32_1 = arith.constant 0 : i32
    return %c0_i32, %c0_i32_0 : i32, i32
  }
  func.func @transform_10(%arg0: i32) -> (i32, i32) {
    %c0_i32 = arith.constant 0 : i32
    %c0_i32_0 = arith.constant 0 : i32
    %c0_i32_1 = arith.constant 0 : i32
    return %c0_i32, %c0_i32_0 : i32, i32
  }
  func.func @transform_11(%arg0: i32) -> (i32, i32) {
    %c0_i32 = arith.constant 0 : i32
    %c0_i32_0 = arith.constant 0 : i32
    %c0_i32_1 = arith.constant 0 : i32
    return %c0_i32, %c0_i32_0 : i32, i32
  }
  func.func @transform_12(%arg0: i32) -> (i32, i32) {
    %c0_i32 = arith.constant 0 : i32
    %c0_i32_0 = arith.constant 0 : i32
    return %c0_i32, %arg0 : i32, i32
  }
  func.func @transform_13(%arg0: i32) -> (i32, i32) {
    %c0_i32 = arith.constant 0 : i32
    %c0_i32_0 = arith.constant 0 : i32
    return %c0_i32, %arg0 : i32, i32
  }
  func.func @transform_14(%arg0: i32) -> (i32, i32) {
    %c0_i32 = arith.constant 0 : i32
    %c0_i32_0 = arith.constant 0 : i32
    return %c0_i32, %arg0 : i32, i32
  }
  func.func @transform_15(%arg0: i32) -> (i32, i32) {
    %c0_i32 = arith.constant 0 : i32
    %c0_i32_0 = arith.constant 0 : i32
    %c0_i32_1 = arith.constant 0 : i32
    return %c0_i32, %c0_i32_0 : i32, i32
  }
  func.func @transform_16(%arg0: i32) -> (i32, i32) {
    %c0_i32 = arith.constant 0 : i32
    %c0_i32_0 = arith.constant 0 : i32
    %c0_i32_1 = arith.constant 0 : i32
    return %c0_i32, %c0_i32_0 : i32, i32
  }
}

</mosaic_0001>

<bundles_post_ra>
// kernel: luong_attn_decoder_step.1
= control target key start
LH: loop header
LB: loop body
LE: loop exit
PB: predicated region body
PF: predicated region fallthrough
CT: control target
= control target key end

     0   :  { %s2319_s0 = inlined_call_operand.vmem [shape: f32[2,32], index: 0, kind: input, shape index: {}]   ;;  %s2320_s1 = inlined_call_operand.vmem [shape: f32[2,32], index: 1, kind: input, shape index: {}, may-alias: {1,15}]   ;;  %s2321_s2 = inlined_call_operand.vmem [shape: f32[8,2,32], index: 2, kind: input, shape index: {}]   ;;  %s2322_s3 = inlined_call_operand.vmem [shape: f32[1,32], index: 3, kind: input, shape index: {}]   ;;  %s2323_s4 = inlined_call_operand.vmem [shape: f32[1,32], index: 4, kind: input, shape index: {}]   ;;  %s2324_s5 = inlined_call_operand.vmem [shape: f32[32,96], index: 5, kind: input, shape index: {}]   ;;  %s2325_s6 = inlined_call_operand.vmem [shape: f32[1,96], index: 6, kind: input, shape index: {}]   ;;  %s2326_s7 = inlined_call_operand.vmem [shape: f32[32,96], index: 7, kind: input, shape index: {}]   ;;  %s2327_s8 = inlined_call_operand.vmem [shape: f32[1,96], index: 8, kind: input, shape index: {}]   ;;  %s2328_s9 = inlined_call_operand.vmem [shape: f32[32,32], index: 9, kind: input, shape index: {}]   ;;  %s2329_s10 = inlined_call_operand.vmem [shape: f32[32,32], index: 10, kind: input, shape index: {}]   ;;  %s2330_s11 = inlined_call_operand.vmem [shape: f32[1,32], index: 11, kind: input, shape index: {}]   ;;  %s2331_s12 = inlined_call_operand.vmem [shape: f32[32,2560], index: 12, kind: input, shape index: {}]   ;;  %s2332_s13 = inlined_call_operand.vmem [shape: f32[1,2560], index: 13, kind: input, shape index: {}]   ;;  %s2333_s14 = inlined_call_operand.hbm [shape: f32[2,2560], index: 14, kind: output, shape index: {0}]   ;;  %s2334_s15 = inlined_call_operand.vmem [shape: f32[2,32], index: 15, kind: output, shape index: {1}, may-alias: {1,15}]   ;;  %s2335_s16 = inlined_call_operand.hbm [shape: f32[2,8], index: 16, kind: output, shape index: {2}]  }
   0x1   :  { %2343 = sst [smem:[#allocation16_spill]] %s2319_s0 }
   0x2   :  { %2344 = sst [smem:[#allocation17_spill]] %s2331_s12 }
   0x3   :  { %22 = vsyncpa [#allocation5], 0 }
   0x4   :  { %24 = vsyncpa [#allocation5 + $0x1], 0 }
   0x5   :  { %25 = vsyncpa [#allocation7], 0  ;;  %s1960_s21 = smov 0   ;;  %s1962_s22 = smov 0  }
   0x6   :  { %s1964_s23 = smov 0   ;;  %s1966_s24 = smov 0  }
   0x7 LB: > { %2345 = sst [smem:[#allocation10_spill]] %s1852_s21  ;;  %s1981_s25 = sadd.s32 4294967295, %s1864_s24   ;;  %s1864_s24 = sphi %s1966_s24, %s2360_s24   ;;  %s1860_s23 = sphi %s1964_s23, %s2363_s23   ;;  %s1856_s22 = sphi %s1962_s22, %s2362_s22   ;;  %s1852_s21 = sphi %s1960_s21, %s2361_s21  }
   0x8   : > { %2346 = sst [smem:[#allocation11_spill]] %s1856_s22  ;;  %s1599_s26 = sadd.s32 4294967294, %s1864_s24  }
   0x9   : > { %2347 = sst [smem:[#allocation12_spill]] %s1860_s23  ;;  %s1985_s27 = sadd.s32 1, %s1864_s24  }
   0xa   : > { %2348 = sst [smem:[#allocation13_spill]] %s1985_s27  ;;  %s290_s28 = sadd.s32 1, %s1860_s23 }
   0xb   : > { %s287_s29 = ssub.s32 %s1864_s24, %s1985_s27  ;;  %p297_p0 = scmp.ne.s32.totalorder %s1860_s23, %s1856_s22 }
   0xc   : > { %p288_p1 = scmp.eq.s32.totalorder %s287_s29, 0  ;;  %p298_p2 = scmp.eq.s32.totalorder %s1864_s24, 0 }
   0xd   : > { %p2342_p3 = scmp.eq.s32.totalorder %s1981_s25, 4  ;;  %p358_p4 = scmp.ne.s32.totalorder %s1856_s22, %s1852_s21 }
   0xe   : > { %s1997_s30 = scalar_select %p288_p1, %s1860_s23, %s290_s28  }
   0xf   : > { %p299_p5 = por %p298_p2, %p297_p0  ;;  %p2001_p6 = por %p2342_p3, %p297_p0 }
  0x10   : > { %2349 = sst [smem:[#allocation14_spill]] %s1997_s30  ;;  %p359_p7 = scmp.eq.s32.totalorder %s1599_s26, 4 }
  0x11   : > { %p1601_p9 = scmp.ge.s32.totalorder %s1864_s24, 5 }
  0x12   : > { %p2005_p8 = por %p359_p7, %p358_p4 }
  0x13   : > { %453 = sbr.rel (%p1601_p9) target bundleno = 42 (0x2a), region = 64 }
  0x14   : > { %s2351_s17 = scalar_select %p2005_p8, 1, 0 }
  0x16   : > { %2352 = sst [smem:[#allocation15_spill]] %s2351_s17 }
  0x18   : > { %456 = sbr.rel (!%p299_p5) target bundleno = 42 (0x2a), region = 68  ;;  %s458_s18 = sand.u32 (%p299_p5), 1, %s1860_s23  }
  0x19   : > { %s1629_s19 = sshll.u32 (%p299_p5), %s1864_s24, 5  ;;  %s1602_s20 = sshll.u32 (%p299_p5), %s458_s18, 7 }
  0x1a   : > { %s2353_s12 = sld [smem:[#allocation17_spill]] (%p299_p5)  ;;  %s460_s26 = scalar_lea.vmem (%p299_p5), [#allocation3], %s1602_s20 }
  0x20   : > { %s2015_s30 = scalar_lea.vmem %s2353_s12, %s1629_s19 }
  0x21   : > { %v476_v0 = vld [vmem:[%s2015_s30] sm:$0xff]  ;;  %v478_v1 = vld [vmem:[%s2015_s30 + $0x8] sm:$0xff]  ;;  %v480_v2 = vld [vmem:[%s2015_s30 + $0x10] sm:$0xff] }
  0x22   : > { %477 = vst [vmem:[%s460_s26] sm:$0xff] %v476_v0  ;;  %479 = vst [vmem:[%s460_s26 + $0x8] sm:$0xff] %v478_v1  ;;  %v482_v3 = vld [vmem:[%s2015_s30 + $0x18] sm:$0xff]  ;;  %v484_v4 = vld [vmem:[%s2015_s30 + $0xa0] sm:$0xff] }
  0x23   : > { %481 = vst [vmem:[%s460_s26 + $0x10] sm:$0xff] %v480_v2  ;;  %v486_v5 = vld [vmem:[%s2015_s30 + $0xa8] sm:$0xff]  ;;  %483 = vst [vmem:[%s460_s26 + $0x18] sm:$0xff] %v482_v3  ;;  %v488_v6 = vld [vmem:[%s2015_s30 + $0xb0] sm:$0xff] }
  0x24   : > { %485 = vst [vmem:[%s460_s26 + $0x20] sm:$0xff] %v484_v4  ;;  %487 = vst [vmem:[%s460_s26 + $0x28] sm:$0xff] %v486_v5  ;;  %v490_v7 = vld [vmem:[%s2015_s30 + $0xb8] sm:$0xff]  ;;  %v492_v8 = vld [vmem:[%s2015_s30 + $0x140] sm:$0xff] }
  0x25   : > { %489 = vst [vmem:[%s460_s26 + $0x30] sm:$0xff] %v488_v6  ;;  %491 = vst [vmem:[%s460_s26 + $0x38] sm:$0xff] %v490_v7  ;;  %v494_v9 = vld [vmem:[%s2015_s30 + $0x148] sm:$0xff]  ;;  %v496_v10 = vld [vmem:[%s2015_s30 + $0x150] sm:$0xff] }
  0x26   : > { %493 = vst [vmem:[%s460_s26 + $0x40] sm:$0xff] %v492_v8  ;;  %v498_v11 = vld [vmem:[%s2015_s30 + $0x158] sm:$0xff]  ;;  %495 = vst [vmem:[%s460_s26 + $0x48] sm:$0xff] %v494_v9  ;;  %v500_v12 = vld [vmem:[%s2015_s30 + $0x1e0] sm:$0xff] }
  0x27   : > { %497 = vst [vmem:[%s460_s26 + $0x50] sm:$0xff] %v496_v10  ;;  %499 = vst [vmem:[%s460_s26 + $0x58] sm:$0xff] %v498_v11  ;;  %v502_v13 = vld [vmem:[%s2015_s30 + $0x1e8] sm:$0xff]  ;;  %v504_v14 = vld [vmem:[%s2015_s30 + $0x1f0] sm:$0xff] }
  0x28   : > { %501 = vst [vmem:[%s460_s26 + $0x60] sm:$0xff] %v500_v12  ;;  %503 = vst [vmem:[%s460_s26 + $0x68] sm:$0xff] %v502_v13  ;;  %v506_v15 = vld [vmem:[%s2015_s30 + $0x1f8] sm:$0xff] }
  0x29   : > { %505 = vst [vmem:[%s460_s26 + $0x70] sm:$0xff] %v504_v14  ;;  %507 = vst [vmem:[%s460_s26 + $0x78] sm:$0xff] %v506_v15 }
  0x2a PF: > { %p1605_p10 = scmp.ge.s32.totalorder %s1864_s24, 1  ;;  %p520_p11 = scmp.lt.s32.totalorder %s1864_s24, 6 }
  0x2c   : > { %p521_p12 = pnand %p1605_p10, %p520_p11 }
  0x2d   : > { %s2036_s18 = sand.u32 (!%p521_p12), 1, %s1856_s22   ;;  %s1608_s19 = sshll.u32 (!%p521_p12), %s1981_s25, 2 }
  0x2e   : > { %524 = sbr.rel (%p521_p12) target bundleno = 2006 (0x7d6), region = 95  ;;  %s1606_s20 = sshll.u32 (!%p521_p12), %s2036_s18, 7 }
  0x2f   : > { %s1607_s28 = sshll.u32 (!%p521_p12), %s2036_s18, 3  ;;  %p582_p13 = scmp.lt.s32.totalorder (!%p521_p12), %s1608_s19, 19 }
  0x30   : > { %s2047_s12 = scalar_lea.vmem (!%p521_p12), [#allocation3], %s1606_s20  ;;  %s2049_s23 = scalar_lea.vmem (!%p521_p12), [#allocation4], %s1607_s28 }
  0x31   : > { %p1609_p0 = scmp.ne.s32.totalorder (!%p521_p12), %s1981_s25, 0 }
  0x33   : > { %s2365_s19 = smov (!%p582_p13, %s1608_s19), 19  ;;  %590 = sbr.rel (%p1609_p0) target bundleno = 1734 (0x6c6), region = 103 }
  0x34   : > { %s2354_s27 = sld [smem:[#allocation16_spill]] (!%p1609_p0)  ;;  %s1868_s30 = smov (!%p1609_p0), 64  }
  0x35   : > { %s1870_s21 = smov (!%p1609_p0), 96  }
  0x38   : > { %v604_v16 = vld [vmem:[%s2324_s5 + $0x18] sm:$0xff]  ;;  %v1866_v18 = vmov 0.0   ;;  %v603_v19 = vld [vmem:[%s2324_s5 + $0x10] sm:$0xff]  ;;  %v602_v21 = vld [vmem:[%s2324_s5 + $0x8] sm:$0xff]  ;;  %vm612_vm0 = vcmask 261120   ;;  %vm1867_vm1 = vmmov 0  }
  0x39   : > { %v689_v17 = vld [vmem:[%s2326_s7 + $0x18] sm:$0xff]  ;;  %1651 = vmatprep.subr.mxu0 %v1866_v18  ;;  %1662 = vmatprep.subr.mxu1 %v1866_v18  ;;  %v688_v20 = vld [vmem:[%s2326_s7 + $0x10] sm:$0xff]  ;;  %v687_v22 = vld [vmem:[%s2326_s7 + $0x8] sm:$0xff]  ;;  %vm803_vm2 = vcmask 254976   ;;  %vm903_vm3 = vcmask 1041409   ;;  %vm905_vm4 = vcmask 1042434  }
  0x3a   : > { %1652 = vmatpush3.msra.mxu0 %v604_v16  ;;  %1663 = vmatpush3.msra.mxu1 %v689_v17  ;;  %v601_v23 = vld [vmem:[%s2324_s5] sm:$0xff]  ;;  %v2135_v56 = vld [vmem:[%s2321_s2 + $0xa] sm:$0x3]  ;;  %v2142_v59 = vld [vmem:[%s2321_s2 + $0xe] sm:$0x3]  ;;  %vm907_vm5 = vcmask 1043459  }
  0x3b   : > { %1653 = vmatprep.subr.mxu0 %v1866_v18  ;;  %1664 = vmatprep.subr.mxu1 %v1866_v18  ;;  %v686_v24 = vld [vmem:[%s2326_s7] sm:$0xff]  ;;  %v2159_v8 = vld [vmem:[%s2321_s2 + $0x8] sm:$0x3]  ;;  %v2166_v11 = vld [vmem:[%s2321_s2 + $0xc] sm:$0x3]  ;;  %vm909_vm6 = vcmask 1044484  }
  0x3c   : > { %1654 = vmatpush3.msra.mxu0 %v603_v19  ;;  %1665 = vmatpush3.msra.mxu1 %v688_v20  ;;  %v591_v25 = vld [vmem:[%s2354_s27] sm:$0x3]  ;;  %s1869_s27 = smov 32   ;;  %v2119_v48 = vld [vmem:[%s2321_s2 + $0x4] sm:$0x3]  ;;  %v869_v20 = vlaneseq  ;;  %vm911_vm7 = vcmask 1045509  }
  0x3d   : > { %1655 = vmatprep.subr.mxu0 %v1866_v18  ;;  %1666 = vmatprep.subr.mxu1 %v1866_v18  ;;  %v592_v26 = vld [vmem:[%s2320_s1] sm:$0x3]  ;;  %v2128_v53 = vld [vmem:[%s2321_s2 + $0x6] sm:$0x3]  ;;  %v2153_v6 = vld [vmem:[%s2321_s2 + $0x2] sm:$0x3] }
  0x3e   : > { %1656 = vmatpush3.msra.mxu0 %v602_v21  ;;  %1667 = vmatpush3.msra.mxu1 %v687_v22  ;;  %v1612_v27 = vld [vmem:[%s2327_s8] ss:$0 sm:$0xff]  ;;  %v870_v21 = vand.u32 127, %v869_v20  ;;  %v2172_v22 = vshrl.u32 %v869_v20, 7  ;;  %vm913_vm8 = vcmask 1046534   ;;  %vm915_vm9 = vcmask 1047559  }
  0x3f   : > { %1657 = vmatprep.subr.mxu0 %v1866_v18  ;;  %1668 = vmatprep.subr.mxu1 %v1866_v18  ;;  %v1610_v33 = vld [vmem:[%s2325_s6] ss:$0 sm:$0xff]  ;;  %vm951_vm10 = vcmask 58368   ;;  %v1080_v20 = vld [vmem:[%s2329_s10 + $0x8] sm:$0xff] }
  0x40   : > { %1658 = vmatpush3.msra.mxu0 %v601_v23  ;;  %1659 = vmatprep.mubr.msk.f32.mxu0 %vm1867_vm1, %v1866_v18  ;;  %v1616_v42 = vld [vmem:[%s2322_s3] ss:$0 sm:$0xff] }
  0x41   : > { %1669 = vmatpush3.msra.mxu1 %v686_v24  ;;  %1670 = vmatprep.mubr.msk.f32.mxu1 %vm1867_vm1, %v1866_v18  ;;  %v2110_v45 = vld [vmem:[%s2321_s2] sm:$0x3]  ;;  %v873_v24 = vsub.s32 %v870_v21, %v2172_v22 }
  0x42   : > { %1660 = vmatmul.mubr.msk.f32.vlgmr.msra.gmra.mxu0 %vm612_vm0, %v591_v25  ;;  %1671 = vmatmul.mubr.msk.f32.vlgmr.msra.gmra.mxu1 %vm612_vm0, %v592_v26  ;;  %v1615_v46 = vld [vmem:[%s2323_s4] ss:$0 sm:$0xff] }
  0x43   : > { %1684 = vmatprep.subr.mxu1 %v1866_v18  ;;  %1692 = vmatprep.mubr.msk.f32.mxu1 %vm1867_vm1, %v1866_v18  ;;  %v812_v47 = vmul.f32 %v1615_v46, %v2110_v45  ;;  %v814_v50 = vmul.f32 %v1615_v46, %v2119_v48  ;;  %v815_v54 = vmul.f32 %v1615_v46, %v2128_v53 }
  0x44   : > { %1673 = vmatprep.subr.mxu0 %v1866_v18  ;;  %1681 = vmatprep.mubr.msk.f32.mxu0 %vm1867_vm1, %v1866_v18  ;;  %v817_v57 = vmul.f32 %v1615_v46, %v2135_v56  ;;  %v819_v60 = vmul.f32 %v1615_v46, %v2142_v59  ;;  %v813_v7 = vmul.f32 %v1615_v46, %v2153_v6 }
  0x45   : > { %v820_v51 = vsel %vm803_vm2, %v812_v47, 0.0  ;;  %v826_v52 = vsel %vm803_vm2, %v814_v50, 0.0  ;;  %v829_v55 = vsel %vm803_vm2, %v815_v54, 0.0  ;;  %v816_v10 = vmul.f32 %v1615_v46, %v2159_v8 }
  0x46   : > { %v835_v58 = vsel %vm803_vm2, %v817_v57, 0.0  ;;  %v841_v61 = vsel %vm803_vm2, %v819_v60, 0.0  ;;  %v823_v9 = vsel %vm803_vm2, %v813_v7, 0.0  ;;  %v818_v13 = vmul.f32 %v1615_v46, %v2166_v11 }
  0x47   : > { %v832_v12 = vsel %vm803_vm2, %v816_v10, 0.0  ;;  %v1012_v10 = vsub.s32 2, %v2172_v22 }
  0x48   : > { %v838_v14 = vsel %vm803_vm2, %v818_v13, 0.0  ;;  %v1082_v13 = vld [vmem:[%s2329_s10 + $0x18] sm:$0xff] }
  0x49   : > { %1674 = vmatpush3.msra.mxu0 %v1082_v13 }
  0x4a   : > { %1675 = vmatprep.subr.mxu0 %v1866_v18 }
 0x102   : > { %v682_v28 = vpop.f32.mrf.mxu0  ;;  %v766_v29 = vpop.f32.mrf.mxu1 }
 0x103   : > { %v767_v30 = vadd.f32 %v1612_v27, %v766_v29  ;;  %v683_v34 = vadd.f32 %v1610_v33, %v682_v28 }
 0x104   : > { %v1672_v31 = vpop.f32.mrf.mxu1  ;;  %v1661_v32 = vpop.f32.mrf.mxu0 }
 0x105   : > { %778 = vrot.lane.b32.xlu0 %v767_v30, %s1868_s30  ;;  %v770_v35 = vadd.f32 %v767_v30, %v683_v34 }
 0x107   : > { %v1614_v36 = vmul.f32 -1.442695, %v770_v35 }
 0x109   : > { %1748 = vpow2.f32 %v1614_v36 }
 0x116   : > { %v1749_v37 = vpop.eup %1748 }
 0x117   : > { %v774_v38 = vadd.f32 1.0, %v1749_v37 }
 0x119   : > { %1750 = vrcp.f32 %v774_v38 }
 0x126   : > { %v1751_v39 = vpop.eup %1750 }
 0x127   : > { %v788_v63 = vsub.f32 1.0, %v1751_v39 }
 0x177   : > { %v779_v40 = vpop.permute.xlu0 %778 }
 0x178   : > { %v781_v41 = vmul.f32 %v1751_v39, %v779_v40 }
 0x17a   : > { %783 = vrot.lane.b32.xlu0 %v781_v41, %s1868_s30 }
 0x17e   : > { %850 = vrot.lane.b32.xlu0 %v1616_v42, %s1869_s27 }
 0x19d   : > { %821 = vadd.xlane.f32.xlu0 %v820_v51 }
 0x1a1   : > { %827 = vadd.xlane.f32.xlu0 %v826_v52 }
 0x1a5   : > { %830 = vadd.xlane.f32.xlu0 %v829_v55 }
 0x1a9   : > { %836 = vadd.xlane.f32.xlu0 %v835_v58 }
 0x1ad   : > { %842 = vadd.xlane.f32.xlu0 %v841_v61 }
 0x1ec   : > { %v784_v43 = vpop.permute.xlu0 %783 }
 0x1ed   : > { %v786_v44 = vadd.f32 %v784_v43, %v683_v34 }
 0x1ef   : > { %1752 = vtanh.f32 %v786_v44 }
 0x1f0   : > { %v851_v3 = vpop.permute.xlu0 %850 }
 0x1fc   : > { %v1753_v49 = vpop.eup %1752 }
 0x1fd   : > { %790 = vrot.lane.b32.xlu1 %v1753_v49, %s1870_s21 }
 0x201   : > { %794 = vrot.lane.b32.xlu1 %v592_v26, %s1869_s27 }
 0x226   : > { %v822_v17 = vpop.xlane.xlu0 %821 }
 0x227   : > { %v874_v27 = vrot.slane %v822_v17, %v873_v24  ;;  %v1019_v17 = vsub.s32 3, %v2172_v22 }
 0x22a   : > { %v828_v19 = vpop.xlane.xlu0 %827 }
 0x22b   : > { %v882_v30 = vrot.slane %v828_v19, %v873_v24  ;;  %v1081_v19 = vld [vmem:[%s2329_s10 + $0x10] sm:$0xff] }
 0x22c   : > { %1676 = vmatpush3.msra.mxu0 %v1081_v19 }
 0x22d   : > { %1677 = vmatprep.subr.mxu0 %v1866_v18 }
 0x22e   : > { %v831_v23 = vpop.xlane.xlu0 %830  ;;  %1678 = vmatpush3.msra.mxu0 %v1080_v20 }
 0x22f   : > { %v886_v29 = vrot.slane %v831_v23, %v873_v24  ;;  %1679 = vmatprep.subr.mxu0 %v1866_v18 }
 0x232   : > { %v837_v25 = vpop.xlane.xlu0 %836 }
 0x233   : > { %v894_v37 = vrot.slane %v837_v25, %v873_v24  ;;  %v1079_v25 = vld [vmem:[%s2329_s10] sm:$0xff] }
 0x234   : > { %1680 = vmatpush3.msra.mxu0 %v1079_v25 }
 0x236   : > { %v843_v36 = vpop.xlane.xlu0 %842 }
 0x237   : > { %v902_v40 = vrot.slane %v843_v36, %v873_v24 }
 0x26f   : > { %v791_v62 = vpop.permute.xlu1 %790 }
 0x270   : > { %v793_v1 = vmul.f32 %v791_v62, %v788_v63  ;;  %v1078_v62 = vld [vmem:[%s2328_s9 + $0x18] sm:$0xff]  ;;  %v1005_v63 = vsub.s32 1, %v2172_v22 }
 0x271   : > { %1685 = vmatpush3.msra.mxu1 %v1078_v62 }
 0x272   : > { %1686 = vmatprep.subr.mxu1 %v1866_v18 }
 0x273   : > { %v795_v0 = vpop.permute.xlu1 %794 }
 0x274   : > { %v797_v2 = vmul.f32 %v1751_v39, %v795_v0  ;;  %v998_v0 = vsub.s32 0, %v2172_v22 }
 0x276   : > { %v2146_v4 = vadd.f32 %v797_v2, %v793_v1  ;;  %v1077_v1 = vld [vmem:[%s2328_s9 + $0x10] sm:$0xff]  ;;  %v1076_v2 = vld [vmem:[%s2328_s9 + $0x8] sm:$0xff] }
 0x277   : > { %1687 = vmatpush3.msra.mxu1 %v1077_v1 }
 0x278   : > { %v853_v5 = vmul.f32 %v851_v3, %v2146_v4  ;;  %1688 = vmatprep.subr.mxu1 %v1866_v18 }
 0x279   : > { %1689 = vmatpush3.msra.mxu1 %v1076_v2 }
 0x27a   : > { %855 = vrot.lane.b32.xlu1 %v853_v5, %s1870_s21  ;;  %1690 = vmatprep.subr.mxu1 %v1866_v18 }
 0x29e   : > { %824 = vadd.xlane.f32.xlu1 %v823_v9  ;;  %v1026_v9 = vsub.s32 4, %v2172_v22 }
 0x2a2   : > { %833 = vadd.xlane.f32.xlu1 %v832_v12  ;;  %v1075_v12 = vld [vmem:[%s2328_s9] sm:$0xff] }
 0x2a3   : > { %1691 = vmatpush3.msra.mxu1 %v1075_v12 }
 0x2a6   : > { %839 = vadd.xlane.f32.xlu1 %v838_v14 }
 0x2ec   : > { %v856_v15 = vpop.permute.xlu1 %855 }
 0x2ed   : > { %v858_v16 = vsel %vm803_vm2, %v856_v15, 0.0 }
 0x2ee   : > { %859 = vadd.xlane.f32.xlu1 %v858_v16  ;;  %v1040_v16 = vsub.s32 6, %v2172_v22 }
 0x327   : > { %v825_v26 = vpop.xlane.xlu1 %824 }
 0x328   : > { %v878_v28 = vrot.slane %v825_v26, %v873_v24 }
 0x32a   : > { %v904_v31 = vsel %vm903_vm3, %v878_v28, %v874_v27  ;;  %v1047_v27 = vsub.s32 7, %v2172_v22 }
 0x32b   : > { %v906_v32 = vsel %vm905_vm4, %v882_v30, %v904_v31  ;;  %v834_v33 = vpop.xlane.xlu1 %833 }
 0x32c   : > { %v908_v34 = vsel %vm907_vm5, %v886_v29, %v906_v32  ;;  %v890_v35 = vrot.slane %v834_v33, %v873_v24 }
 0x32e   : > { %v910_v38 = vsel %vm909_vm6, %v890_v35, %v908_v34 }
 0x32f   : > { %v840_v39 = vpop.xlane.xlu1 %839  ;;  %v912_v42 = vsel %vm911_vm7, %v894_v37, %v910_v38 }
 0x330   : > { %v898_v41 = vrot.slane %v840_v39, %v873_v24  ;;  %v1033_v24 = vsub.s32 5, %v2172_v22 }
 0x332   : > { %v914_v43 = vsel %vm913_vm8, %v898_v41, %v912_v42 }
 0x333   : > { %v916_v44 = vsel %vm915_vm9, %v902_v40, %v914_v43 }
 0x334   : > { %918 = vxpose.xlu0.b32.start.end [1/1] (short) (narrow) %v916_v44, 8 }
 0x377   : > { %v860_v46 = vpop.xlane.xlu1 %859 }
 0x3b0   : > { %v934_v47 = vpop.trf.xlu0 }
 0x3b1   : > { %v950_v49 = vadd.f32 %v934_v47, %v860_v46 }
 0x3b3   : > { %v952_v50 = vsel %vm951_vm10, %v950_v49, -inf }
 0x3b4   : > { %953 = vmax.xlane.f32.xlu1 %v952_v50 }
 0x43d   : > { %v954_v51 = vpop.xlane.xlu1 %953 }
 0x43e   : > { %v955_v52 = vsub.f32 %v950_v49, %v954_v51 }
 0x440   : > { %v956_v54 = vmul.f32 1.442695, %v955_v52 }
 0x442   : > { %1754 = vpow2.f32 %v956_v54 }
 0x44f   : > { %v1755_v55 = vpop.eup %1754 }
 0x450   : > { %v958_v57 = vsel %vm951_vm10, %v1755_v55, 0.0 }
 0x451   : > { %959 = vadd.xlane.f32.xlu1 %v958_v57 }
 0x4da   : > { %v960_v58 = vpop.xlane.xlu1 %959 }
 0x4db   : > { %1756 = vrcp.f32 %v960_v58  ;;  %v1619_v58 = vld [vmem:[%s2330_s11] ss:$0 sm:$0xff] }
 0x4e8   : > { %v1757_v60 = vpop.eup %1756 }
 0x4e9   : > { %v962_v61 = vmul.f32 %v1757_v60, %v1755_v55 }
 0x4eb   : > { %964 = vxpose.xlu1.b32.start.end [1/1] (short) (narrow) %v962_v61, 8  ;;  %963 = vst.msk [vmem:[#allocation6] sm:$0x3] %vm951_vm10, %v962_v61 }
 0x567   : > { %v980_v3 = vpop.trf.xlu1 }
 0x568   : > { %v1006_v5 = vrot.slane %v980_v3, %v1005_v63  ;;  %v999_v7 = vrot.slane %v980_v3, %v998_v0  ;;  %v1027_v14 = vrot.slane %v980_v3, %v1026_v9  ;;  %v1013_v15 = vrot.slane %v980_v3, %v1012_v10 }
 0x569   : > { %v1041_v21 = vrot.slane %v980_v3, %v1040_v16  ;;  %v1020_v23 = vrot.slane %v980_v3, %v1019_v17  ;;  %v1034_v26 = vrot.slane %v980_v3, %v1033_v24  ;;  %v1048_v28 = vrot.slane %v980_v3, %v1047_v27 }
 0x56a   : > { %1008 = vbcast.lane.b32.xlu1 %v1006_v5, 256  ;;  %1001 = vbcast.lane.b32.xlu0 %v999_v7, 256 }
 0x56e   : > { %1029 = vbcast.lane.b32.xlu1 %v1027_v14, 256  ;;  %1015 = vbcast.lane.b32.xlu0 %v1013_v15, 256 }
 0x572   : > { %1043 = vbcast.lane.b32.xlu1 %v1041_v21, 256  ;;  %1022 = vbcast.lane.b32.xlu0 %v1020_v23, 256 }
 0x576   : > { %800 = vrot.lane.b32.xlu1 %v2146_v4, %s1870_s21  ;;  %1036 = vbcast.lane.b32.xlu0 %v1034_v26, 256 }
 0x57a   : > { %1050 = vbcast.lane.b32.xlu0 %v1048_v28, 256 }
 0x5dc   : > { %v1009_v29 = vpop.permute.xlu1 %1008  ;;  %v1002_v30 = vpop.permute.xlu0 %1001 }
 0x5dd   : > { %v1053_v31 = vmul.f32 %v1009_v29, %v2153_v6  ;;  %v1052_v32 = vmul.f32 %v1002_v30, %v2110_v45 }
 0x5df   : > { %v1061_v18 = vsel %vm803_vm2, %v1053_v31, 0.0  ;;  %v1060_v35 = vsel %vm803_vm2, %v1052_v32, 0.0 }
 0x5e0   : > { %v1030_v33 = vpop.permute.xlu1 %1029  ;;  %v1016_v34 = vpop.permute.xlu0 %1015  ;;  %v1062_v4 = vadd.f32 %v1061_v18, %v1060_v35 }
 0x5e1   : > { %v1054_v22 = vmul.f32 %v1016_v34, %v2119_v48  ;;  %v1056_v39 = vmul.f32 %v1030_v33, %v2159_v8 }
 0x5e3   : > { %v1063_v36 = vsel %vm803_vm2, %v1054_v22, 0.0  ;;  %v1067_v44 = vsel %vm803_vm2, %v1056_v39, 0.0 }
 0x5e4   : > { %v1044_v37 = vpop.permute.xlu1 %1043  ;;  %v1023_v38 = vpop.permute.xlu0 %1022  ;;  %v1064_v6 = vadd.f32 %v1063_v36, %v1062_v4 }
 0x5e5   : > { %v1055_v40 = vmul.f32 %v1023_v38, %v2128_v53  ;;  %v1058_v46 = vmul.f32 %v1044_v37, %v2166_v11 }
 0x5e7   : > { %v1065_v45 = vsel %vm803_vm2, %v1055_v40, 0.0  ;;  %v1071_v50 = vsel %vm803_vm2, %v1058_v46, 0.0 }
 0x5e8   : > { %v1066_v41 = vadd.f32 %v1065_v45, %v1064_v6  ;;  %v801_v42 = vpop.permute.xlu1 %800  ;;  %v1037_v43 = vpop.permute.xlu0 %1036 }
 0x5e9   : > { %804 = vst.msk [vmem:[%s2334_s15] sm:$0x3] %vm803_vm2, %v801_v42  ;;  %v1057_v48 = vmul.f32 %v1037_v43, %v2135_v56  ;;  %1693 = vmatmul.mubr.msk.f32.vlgmr.msra.gmra.mxu1 %vm612_vm0, %v801_v42 }
 0x5ea   : > { %v1068_v53 = vadd.f32 %v1067_v44, %v1066_v41 }
 0x5eb   : > { %v1069_v8 = vsel %vm803_vm2, %v1057_v48, 0.0 }
 0x5ec   : > { %v1070_v47 = vadd.f32 %v1069_v8, %v1068_v53  ;;  %v1051_v49 = vpop.permute.xlu0 %1050 }
 0x5ed   : > { %v1059_v51 = vmul.f32 %v1051_v49, %v2142_v59 }
 0x5ee   : > { %v1072_v52 = vadd.f32 %v1071_v50, %v1070_v47 }
 0x5ef   : > { %v1073_v11 = vsel %vm803_vm2, %v1059_v51, 0.0 }
 0x5f0   : > { %v1074_v54 = vadd.f32 %v1073_v11, %v1072_v52 }
 0x5f2   : > { %1682 = vmatmul.mubr.msk.f32.vlgmr.msra.gmra.mxu0 %vm612_vm0, %v1074_v54 }
 0x6a9   : > { %v1224_v55 = vpop.f32.mrf.mxu1 }
 0x6ab   : > { %v1694_v57 = vpop.f32.mrf.mxu1 }
 0x6b2   : > { %v1152_v56 = vpop.f32.mrf.mxu0 }
 0x6b3   : > { %v1225_v60 = vadd.f32 %v1224_v55, %v1152_v56 }
 0x6b4   : > { %v1683_v61 = vpop.f32.mrf.mxu0 }
 0x6b5   : > { %v1235_v62 = vadd.f32 %v1619_v58, %v1225_v60 }
 0x6b7   : > { %1758 = vtanh.f32 %v1235_v62 }
 0x6c4   : > { %v1759_v63 = vpop.eup %1758 }
 0x6c5   : > { %1237 = vst.msk [vmem:[#allocation2] sm:$0x3] %vm803_vm2, %v1759_v63 }
 0x6c6 PF: > { %v1252_v59 = vld [vmem:[%s2047_s12 + $0x68] sm:$0xff]  ;;  %v1254_v0 = vld [vmem:[%s2047_s12 + $0x78] sm:$0xff]  ;;  %v1251_v1 = vld [vmem:[%s2047_s12 + $0x60] sm:$0xff]  ;;  %vm1277_vm11 = vcmask 261120   ;;  %v1871_v21 = vmov 0.0   ;;  %s1872_s29 = smov [#allocation6]  }
 0x6c7   : > { %1305 = vmatprep.subr.mxu0 %v1252_v59  ;;  %1376 = vmatprep.subr.mxu1 %v1254_v0  ;;  %v1253_v2 = vld [vmem:[%s2047_s12 + $0x70] sm:$0xff]  ;;  %v1248_v3 = vld [vmem:[%s2047_s12 + $0x48] sm:$0xff]  ;;  %v1250_v5 = vld [vmem:[%s2047_s12 + $0x58] sm:$0xff]  ;;  %s1511_s22 = sshll.u32 %s1872_s29, 4  ;;  %s1512_s22 = int_to_ptr.vmem [resolvable:$true] %s1511_s22 }
 0x6c8   : > { %1306 = vmatpush1.msra.mxu0 %v1251_v1  ;;  %1377 = vmatpush1.msra.mxu1 %v1253_v2  ;;  %v1247_v7 = vld [vmem:[%s2047_s12 + $0x40] sm:$0xff]  ;;  %v1249_v9 = vld [vmem:[%s2047_s12 + $0x50] sm:$0xff]  ;;  %v1244_v10 = vld [vmem:[%s2047_s12 + $0x28] sm:$0xff]  ;;  %s1776_s17 = scalar_lea.vmem %s1512_s22, 32  ;;  %p1783_p5 = scmp.lt.s32.totalorder %s1512_s22, %s1512_s22 }
 0x6c9   : > { %1307 = vmatprep.subr.mxu0 %v1248_v3  ;;  %1378 = vmatprep.subr.mxu1 %v1250_v5  ;;  %v1246_v12 = vld [vmem:[%s2047_s12 + $0x38] sm:$0xff]  ;;  %v1243_v13 = vld [vmem:[%s2047_s12 + $0x20] sm:$0xff]  ;;  %v1245_v14 = vld [vmem:[%s2047_s12 + $0x30] sm:$0xff]  ;;  %p1777_p1 = scmp.ne.s32.totalorder %s1512_s22, %s1776_s17  ;;  %p1784_p7 = scmp.lt.s32.totalorder %s1776_s17, %s1776_s17 }
 0x6ca   : > { %1308 = vmatpush1.msra.mxu0 %v1247_v7  ;;  %1379 = vmatpush1.msra.mxu1 %v1249_v9  ;;  %v1240_v15 = vld [vmem:[%s2047_s12 + $0x8] sm:$0xff]  ;;  %v1242_v16 = vld [vmem:[%s2047_s12 + $0x18] sm:$0xff]  ;;  %v1239_v17 = vld [vmem:[%s2047_s12] sm:$0xff] }
 0x6cb   : > { %1309 = vmatprep.subr.mxu0 %v1244_v10  ;;  %1380 = vmatprep.subr.mxu1 %v1246_v12  ;;  %v1241_v19 = vld [vmem:[%s2047_s12 + $0x10] sm:$0xff]  ;;  %p1778_p2 = pnand %p1777_p1, %p2342_p3  ;;  %p1785_p9 = por %p1784_p7, %p1783_p5 }
 0x6cc   : > { %1310 = vmatpush1.msra.mxu0 %v1243_v13  ;;  %1381 = vmatpush1.msra.mxu1 %v1245_v14  ;;  %v1238_v20 = vld [vmem:[#allocation2] sm:$0x3] }
 0x6cd   : > { %1311 = vmatprep.subr.mxu0 %v1240_v15  ;;  %1382 = vmatprep.subr.mxu1 %v1242_v16  ;;  %p1779_p4 = pneg %p1778_p2 }
 0x6ce   : > { %1312 = vmatpush1.msra.mxu0 %v1239_v17  ;;  %1345 = vmatprep.mubr.f32.mxu0 %v1871_v21 }
 0x6cf   : > { %1383 = vmatpush1.msra.mxu1 %v1241_v19  ;;  %1416 = vmatprep.mubr.f32.mxu1 %v1871_v21  ;;  %p1786_p10 = pnand %p1785_p9, %p1779_p4 }
 0x6d0   : > { %1620 = vmatmul.mubr.msk.f32.vlgmr.msra.gmra.mxu0 %vm1277_vm11, %v1238_v20  ;;  %1621 = vmatmul.mubr.msk.f32.vlgmr.msra.gmra.mxu1 %vm1277_vm11, %v1238_v20 }
 0x6d1   : > { %1789 = shalt.err (!%p1786_p10)
}
 0x6d2   : > { %1697 = dma.vmem_to_hbm [thread:$0]  (%p2342_p3), %s1512_s22, 32, %s2335_s16, [#allocation7]   ;;  %v1257_v23 = vlaneseq  ;;  %v1873_v57 = vmov 1983009808  }
 0x6d3   : > { %s2355_s27 = scalar_lea.vmem %s2332_s13, %s2365_s19  ;;  %v1466_v56 = vunpack.c.l.s4 %v1873_v57  ;;  %s1630_s19 = sshll.u32 %s1981_s25, 7 }
 0x6d4   : > { %v2267_v24 = vshrl.u32 %v1257_v23, 7  ;;  %v1255_v27 = vld [vmem:[%s2355_s27] sm:$0xf]  ;;  %s1497_s28 = sshll.u32 %s2049_s23, 4  ;;  %s1495_s22 = scalar_lea.hbm %s2333_s14, %s1630_s19  ;;  %s1498_s28 = int_to_ptr.vmem [resolvable:$true] %s1497_s28 }
 0x6d5   : > { %v1467_v62 = vunpack.c.0.s8 %v1466_v56  ;;  %s1483_s17 = scalar_lea.sflag [#allocation5], %s2036_s18  ;;  %s1800_s12 = scalar_lea.vmem %s1498_s28, 128 }
 0x6d6   : > { %v1259_v25 = vsub.s32 0, %v2267_v24  ;;  %v1267_v26 = vsub.s32 2, %v2267_v24  ;;  %v1263_v28 = vsub.s32 1, %v2267_v24  ;;  %v1271_v29 = vsub.s32 3, %v2267_v24  ;;  %p1801_p11 = scmp.ne.s32.totalorder %s1498_s28, %s1800_s12  ;;  %s1874_s26 = smov [#allocation4]  }
 0x6d7   : > { %v1470_v13 = vsub.s32 %v1467_v62, %v2267_v24  ;;  %s1804_s20 = sshll.u32 %s1874_s26, 4  ;;  %s1805_s20 = int_to_ptr.vmem [resolvable:$false] %s1804_s20 }
 0x6d8   : > { %v1260_v30 = vrot.slane %v1255_v27, %v1259_v25  ;;  %v1268_v31 = vrot.slane %v1255_v27, %v1267_v26  ;;  %v1264_v34 = vrot.slane %v1255_v27, %v1263_v28  ;;  %v1272_v18 = vrot.slane %v1255_v27, %v1271_v29  ;;  %p1802_p12 = pnand %p1801_p11, %p2001_p6  ;;  %s1806_s21 = scalar_lea.vmem %s1805_s20, 256 }
 0x6d9   : > { %p1807_p0 = scmp.lt.s32.totalorder %s1498_s28, %s1805_s20  ;;  %p1808_p1 = scmp.lt.s32.totalorder %s1806_s21, %s1800_s12 }
 0x6da   : > { %p1803_p13 = pneg %p1802_p12 }
 0x6db   : > { %p1809_p2 = por %p1808_p1, %p1807_p0 }
 0x6dd   : > { %p1810_p4 = pnand %p1809_p2, %p1803_p13 }
 0x790   : > { %v1347_v32 = vpop.f32.mrf.mxu0  ;;  %v1418_v33 = vpop.f32.mrf.mxu1 }
 0x791   : > { %v1348_v35 = vadd.f32 %v1347_v32, %v1260_v30  ;;  %v1419_v22 = vadd.f32 %v1418_v33, %v1268_v31 }
 0x792   : > { %v1349_v36 = vpop.f32.mrf.mxu0  ;;  %v1420_v4 = vpop.f32.mrf.mxu1 }
 0x793   : > { %v1427_v37 = vand.u32 2147483647, %v1348_v35  ;;  %v1429_v38 = vand.u32 2147483647, %v1419_v22  ;;  %v1350_v39 = vadd.f32 %v1349_v36, %v1264_v34  ;;  %v1421_v40 = vadd.f32 %v1420_v4, %v1272_v18 }
 0x794   : > { %v1423_v1 = vmin.f32 %v1348_v35, 0.0  ;;  %v1425_v5 = vmin.f32 %v1419_v22, 0.0 }
 0x795   : > { %v1431_v6 = vsub.f32 0.0, %v1427_v37  ;;  %v1433_v45 = vsub.f32 0.0, %v1429_v38  ;;  %v1428_v41 = vand.u32 2147483647, %v1350_v39  ;;  %v1430_v42 = vand.u32 2147483647, %v1421_v40 }
 0x796   : > { %v1424_v2 = vmin.f32 %v1350_v39, 0.0  ;;  %v1426_v7 = vmin.f32 %v1421_v40, 0.0 }
 0x797   : > { %v1435_v43 = vmul.f32 1.442695, %v1431_v6  ;;  %v1439_v44 = vmul.f32 1.442695, %v1433_v45  ;;  %v1432_v46 = vsub.f32 0.0, %v1428_v41  ;;  %v1434_v48 = vsub.f32 0.0, %v1430_v42 }
 0x799   : > { %1760 = vpow2.f32 %v1435_v43  ;;  %v1437_v53 = vmul.f32 1.442695, %v1432_v46  ;;  %v1441_v8 = vmul.f32 1.442695, %v1434_v48 }
 0x79a   : > { %1762 = vpow2.f32 %v1439_v44 }
 0x79b   : > { %1764 = vpow2.f32 %v1437_v53 }
 0x79c   : > { %1766 = vpow2.f32 %v1441_v8 }
 0x7a6   : > { %v1761_v47 = vpop.eup %1760 }
 0x7a7   : > { %v1763_v49 = vpop.eup %1762  ;;  %v1443_v50 = vadd.f32 1.0, %v1761_v47 }
 0x7a8   : > { %v1445_v51 = vadd.f32 1.0, %v1763_v49  ;;  %v1765_v52 = vpop.eup %1764 }
 0x7a9   : > { %1768 = vlog2.f32 %v1443_v50  ;;  %v1767_v11 = vpop.eup %1766  ;;  %v1444_v54 = vadd.f32 1.0, %v1765_v52 }
 0x7aa   : > { %1770 = vlog2.f32 %v1445_v51  ;;  %v1446_v55 = vadd.f32 1.0, %v1767_v11 }
 0x7ab   : > { %1772 = vlog2.f32 %v1444_v54 }
 0x7ac   : > { %1774 = vlog2.f32 %v1446_v55 }
 0x7b6   : > { %v1769_v58 = vpop.eup %1768 }
 0x7b7   : > { %v1771_v60 = vpop.eup %1770  ;;  %v1448_v61 = vmul.f32 0.6931472, %v1769_v58 }
 0x7b8   : > { %v1773_v63 = vpop.eup %1772  ;;  %v1452_v59 = vmul.f32 0.6931472, %v1771_v60 }
 0x7b9   : > { %v1775_v0 = vpop.eup %1774  ;;  %v1450_v3 = vmul.f32 0.6931472, %v1773_v63  ;;  %v1455_v10 = vsub.f32 %v1423_v1, %v1448_v61 }
 0x7ba   : > { %v1454_v9 = vmul.f32 0.6931472, %v1775_v0  ;;  %v1457_v14 = vsub.f32 %v1425_v5, %v1452_v59 }
 0x7bb   : > { %v1456_v12 = vsub.f32 %v1424_v2, %v1450_v3 }
 0x7bc   : > { %v1458_v15 = vsub.f32 %v1426_v7, %v1454_v9 }
 0x7bd   : > { %v1463_v16 = vcombine.low %v1455_v10, %v1456_v12 }
 0x7be   : > { %v1464_v17 = vcombine.low %v1457_v14, %v1458_v15 }
 0x7bf   : > { %v1471_v19 = vrot.slane %v1463_v16, %v1470_v13 }
 0x7c0   : > { %v1478_v20 = vrot.slane %v1464_v17, %v1470_v13 }
 0x7c2   : > { %v1479_v21 = vcombine.low %v1471_v19, %v1478_v20 }
 0x7c4   : > { %1481 = vst [vmem:[%s2049_s23] sm:$0xff] %v1479_v21 }
 0x7c5   : > { %1813 = shalt.err (!%p1810_p4)
}
 0x7c6   : > { %s1814_s27 = scalar_lea.hbm %s1495_s22, 128  ;;  %s1818_s19 = scalar_lea.hbm %s2333_s14, 640 }
 0x7c7   : > { %p1815_p5 = scmp.ne.s32.totalorder %s1495_s22, %s1814_s27  ;;  %p1819_p10 = scmp.lt.s32.totalorder %s1495_s22, %s2333_s14 }
 0x7c8   : > { %p1820_p11 = scmp.lt.s32.totalorder %s1818_s19, %s1814_s27 }
 0x7c9   : > { %p1816_p7 = pnand %p1815_p5, %p2001_p6 }
 0x7ca   : > { %p1821_p12 = por %p1820_p11, %p1819_p10 }
 0x7cb   : > { %p1817_p9 = pneg %p1816_p7 }
 0x7cd   : > { %p1822_p3 = pnand %p1821_p12, %p1817_p9 }
 0x7cf   : > { %1825 = shalt.err (!%p1822_p3)
}
 0x7d0   : > { %1695 = dma.vmem_to_hbm [thread:$0]  (%p2001_p6), %s1498_s28, 128, %s1495_s22, %s1483_s17  }
 0x7d1   : > { %p2356_p13 = scmp.eq.s32.totalorder %s1981_s25, 4 }
 0x7d3   : > { %1843 = dma.done.wait (%p2356_p13), [#allocation7], 32   ;;  %p2357_p0 = pmov %p2356_p13 }
 0x7d5   : > { %1845 = vsyncadd (%p2357_p0), [#allocation7], 4294967264 }
 0x7d6 PF: > { %s2358_s12 = sld [smem:[#allocation10_spill]]  ;;  %p1707_p1 = scmp.ge.s32.totalorder %s1864_s24, 2 }
 0x7d8   : > { %p1702_p2 = pnand %p1707_p1, %p2005_p8 }
 0x7da   : > { %p1703_p4 = pneg %p1702_p2 }
 0x7dc   : > { %s1530_s20 = sand.u32 1, %s2358_s12  }
 0x7dd   : > { %s1531_s21 = scalar_lea.sflag [#allocation5], %s1530_s20 }
 0x7de   : > { %1847 = dma.done.wait (%p1703_p4), %s1531_s21, 128  }
 0x7df   : > { %1849 = vsyncadd (%p1703_p4), %s1531_s21, 4294967168  ;;  %s2360_s24 = sld [smem:[#allocation13_spill]] }
 0x7e0   : > { %s2361_s21 = sld [smem:[#allocation11_spill]] }
 0x7e1   : > { %s2362_s22 = sld [smem:[#allocation12_spill]] }
 0x7e2   : > { %s2363_s23 = sld [smem:[#allocation14_spill]] }
 0x7e5   : > { %p28_p3 = scmp.ge.s32.totalorder %s2360_s24, 7  }
 0x7e7   :  { %30 = sbr.rel (!%p28_p3) target bundleno = 7 (0x7), region = 162 }
 0x7ec   :  { %1536 = vsyncpa [#allocation5], 1 }
 0x7ed   :  { %1538 = vsyncpa [#allocation5 + $0x1], 1 }
 0x7ee   :  { %1539 = vsyncpa [#allocation7], 1 }

</bundles_post_ra>
